<compile_context>
chip_gen: v7x
topology: tpu7x:2x2x1
jax: 0.10.0
libtpu: 0.0.40
codegen_flags: <defaults>
</compile_context>

<pallas_src>
import jax
import jax.numpy as jnp
from jax.experimental import pallas as pl
from jax.experimental.pallas import tpu as pltpu

HIDDEN_SIZE = 16       # module-level hidden_size
EMBEDDING_SIZE = 16    # module-level embedding_size (== GRU cell hidden size)
OUTPUT_SIZE = 32       # vocabulary size of the decoder output layer

H = EMBEDDING_SIZE
V = OUTPUT_SIZE

# Packed parameter slab (SLAB_ROWS, 128), float32:
#   rows  0:16, lanes 0:48  -> W_ih^T   (16, 48)
#   rows 16:32, lanes 0:48  -> W_hh^T   (16, 48)
#   rows 32:48, lanes 0:32  -> W_out^T  (16, 32)
#   row  48   , lanes 0:48  -> b_ih
#   row  49   , lanes 0:48  -> b_hh
#   row  50   , lanes 0:32  -> b_out
#   rows 51:56              -> zero padding (sublane multiple of 8)
SLAB_ROWS = 56

# Fused output row layout (128 lanes):
#   [logp(0:32) | hy(32:48) | r(48:64) | i(64:80) | n(80:96) | pad(96:128)]


def _decoder_kernel(x_ref, h0_ref, p_ref, out_ref, gi_scr):
    """All T decoder steps in one invocation; hidden state is a fori_loop carry."""
    T = x_ref.shape[0]

    # Resident, pre-transposed parameters (static slices of one VMEM slab).
    w_ih = p_ref[0:16, :]          # (16,128), lanes 0:48 = W_ih^T, rest zero
    w_hh = p_ref[16:32, :]         # (16,128), lanes 0:48 = W_hh^T, rest zero
    b_ih = p_ref[48:49, :]         # (1,128),  lanes 0:48 = b_ih
    b_hh = p_ref[49:50, :]         # (1,128),  lanes 0:48 = b_hh

    # Hoisted input-side gate pre-activations for ALL steps (no sequential dep):
    # gi_all[t, 0:48] = x_t @ W_ih^T + b_ih   (lanes 48:128 are zero).
    gi_scr[...] = jnp.dot(x_ref[...], w_ih,
                          preferred_element_type=jnp.float32) + b_ih

    zeros_lo = jnp.zeros((1, V), jnp.float32)
    zeros_hi = jnp.zeros((1, 128 - V - 4 * H), jnp.float32)

    def body(t, h):
        gi = gi_scr[pl.ds(t, 1), :]                        # (1,128)
        gh = jnp.dot(h, w_hh, preferred_element_type=jnp.float32) + b_hh
        s = gi + gh                                        # lane-aligned VPU add
        r = jax.nn.sigmoid(s[:, 0:H])
        i = jax.nn.sigmoid(s[:, H:2 * H])
        n = jnp.tanh(gi[:, 2 * H:3 * H] + r * gh[:, 2 * H:3 * H])
        hy = n + i * (h - n)
        # One unmasked 128-lane store per step (logp lanes filled after loop).
        out_ref[pl.ds(t, 1), :] = jnp.concatenate(
            [zeros_lo, hy, r, i, n, zeros_hi], axis=-1)
        return hy

    jax.lax.fori_loop(0, T, body, h0_ref[...], unroll=True)

    # Batched output projection + LogSoftmax(dim=1) outside the recurrence.
    hy_all = out_ref[:, V:V + H]                           # (T,16)
    logits = jnp.dot(hy_all, p_ref[32:48, :],
                     preferred_element_type=jnp.float32)[:, 0:V] + p_ref[50:51, 0:V]
    m = jnp.max(logits, axis=-1, keepdims=True)
    lse = jnp.log(jnp.sum(jnp.exp(logits - m), axis=-1, keepdims=True)) + m
    out_ref[:, 0:V] = logits - lse


@jax.jit
def my_decoder_rnn_decode(x_seq, hidden0, param_slab):
    """Runs T sequential decoder steps inside a single pallas_call (grid=()).

    x_seq: (T, 16), hidden0: (1, 16), param_slab: (56, 128) packed parameters.
    Returns (logp (T,32), hy (T,16), r (T,16), i (T,16), n (T,16)).
    """
    T = x_seq.shape[0]
    out = pl.pallas_call(
        _decoder_kernel,
        out_shape=jax.ShapeDtypeStruct((T, 128), jnp.float32),
        in_specs=[
            pl.BlockSpec((T, H), lambda: (0, 0)),             # inputs
            pl.BlockSpec((1, H), lambda: (0, 0)),             # initial hidden
            pl.BlockSpec((SLAB_ROWS, 128), lambda: (0, 0)),   # weight slab
        ],
        out_specs=pl.BlockSpec((T, 128), lambda: (0, 0)),     # fused output slab
        scratch_shapes=[pltpu.VMEM((T, 128), jnp.float32)],   # gi_all
    )(x_seq, hidden0, param_slab)

    logp = out[:, 0:V]
    hy = out[:, V:V + H]
    r = out[:, V + H:V + 2 * H]
    i = out[:, V + 2 * H:V + 3 * H]
    n = out[:, V + 3 * H:V + 4 * H]
    return logp, hy, r, i, n


def my_decoder_rnn_forward(x, hidden, param_slab):
    """Exactly MyDecoderRNN.forward (use_same_embedding=True): one GRU step."""
    x2 = x.reshape(1, -1).astype(jnp.float32)        # output.view(1, -1)
    h2 = hidden.reshape(1, -1).astype(jnp.float32)   # hidden.view(1, -1)
    logp, hy, r, i, n = my_decoder_rnn_decode(x2, h2, param_slab)
    return logp, hy[None], r, i, n                   # hidden.unsqueeze(0)


def init_params(key):
    """Deterministic synthetic parameters matching the PyTorch shapes."""
    stdv = 1.0 / (H ** 0.5)
    ks = jax.random.split(key, 6)
    w_ih = jax.random.uniform(ks[0], (3 * H, HIDDEN_SIZE), jnp.float32, -stdv, stdv)
    w_hh = jax.random.uniform(ks[1], (3 * H, H), jnp.float32, -stdv, stdv)
    b_ih = jax.random.uniform(ks[2], (3 * H,), jnp.float32, -stdv, stdv)
    b_hh = jax.random.uniform(ks[3], (3 * H,), jnp.float32, -stdv, stdv)
    stdv_o = 1.0 / (HIDDEN_SIZE ** 0.5)
    w_out = jax.random.uniform(ks[4], (V, HIDDEN_SIZE), jnp.float32, -stdv_o, stdv_o)
    b_out = jax.random.uniform(ks[5], (V,), jnp.float32, -stdv_o, stdv_o)
    return (w_ih, w_hh, b_ih, b_hh, w_out, b_out)


def pack_params(params):
    """One-time packing: pre-transposed weights + biases into one aligned slab.

    W_ih^T and W_hh^T are stacked on separate row ranges, both at lanes 0:48,
    so the in-kernel gi + gh adds are lane-aligned.
    """
    w_ih, w_hh, b_ih, b_hh, w_out, b_out = params
    slab = jnp.zeros((SLAB_ROWS, 128), jnp.float32)
    slab = slab.at[0:16, 0:48].set(jnp.asarray(w_ih, jnp.float32).T)
    slab = slab.at[16:32, 0:48].set(jnp.asarray(w_hh, jnp.float32).T)
    slab = slab.at[32:48, 0:32].set(jnp.asarray(w_out, jnp.float32).T)
    slab = slab.at[48, 0:48].set(jnp.asarray(b_ih, jnp.float32))
    slab = slab.at[49, 0:48].set(jnp.asarray(b_hh, jnp.float32))
    slab = slab.at[50, 0:32].set(jnp.asarray(b_out, jnp.float32))
    return slab


def _reference_step(x, h, params):
    """Pure-JAX reference for one GRU decoder step (high-precision matmuls)."""
    w_ih, w_hh, b_ih, b_hh, w_out, b_out = params
    hp = jax.lax.Precision.HIGHEST
    gi = jnp.dot(x, w_ih.T, precision=hp) + b_ih
    gh = jnp.dot(h, w_hh.T, precision=hp) + b_hh
    r = jax.nn.sigmoid(gi[:, 0:H] + gh[:, 0:H])
    i = jax.nn.sigmoid(gi[:, H:2 * H] + gh[:, H:2 * H])
    n = jnp.tanh(gi[:, 2 * H:3 * H] + r * gh[:, 2 * H:3 * H])
    hy = n + i * (h - n)
    logits = jnp.dot(hy, w_out.T, precision=hp) + b_out
    logp = jax.nn.log_softmax(logits, axis=1)
    return logp, hy, r, i, n


if __name__ == "__main__":
    key = jax.random.PRNGKey(0)
    k_p, k_x, k_h, k_seq = jax.random.split(key, 4)

    params = init_params(k_p)
    slab = pack_params(params)

    # use_same_embedding=True path: input is already a (1, embedding_size) float vector.
    # TODO(synk): use_same_embedding=False path (nn.Embedding lookup) not implemented;
    #             the embedding gather is glue-level and would live outside the kernel.
    x = jax.random.normal(k_x, (1, EMBEDDING_SIZE), jnp.float32)
    hidden = jax.random.normal(k_h, (1, 1, EMBEDDING_SIZE), jnp.float32)

    # --- Single-step forward (== MyDecoderRNN.forward) ---
    logp, hy, rg, ig, ng = jax.block_until_ready(
        my_decoder_rnn_forward(x, hidden, slab))

    assert logp.shape == (1, OUTPUT_SIZE)
    assert hy.shape == (1, 1, EMBEDDING_SIZE)
    assert rg.shape == ig.shape == ng.shape == (1, EMBEDDING_SIZE)
    assert abs(float(jnp.sum(jnp.exp(logp))) - 1.0) < 1e-4

    tol = dict(atol=2e-2, rtol=1e-2)
    r_logp, r_hy, r_rg, r_ig, r_ng = _reference_step(x, hidden.reshape(1, -1), params)
    assert jnp.allclose(logp, r_logp, **tol)
    assert jnp.allclose(hy[0], r_hy, **tol)
    assert jnp.allclose(rg, r_rg, **tol)
    assert jnp.allclose(ig, r_ig, **tol)
    assert jnp.allclose(ng, r_ng, **tol)

    # --- Multi-step decode: T sequential steps amortized in ONE pallas_call ---
    T = 8
    x_seq = jax.random.normal(k_seq, (T, EMBEDDING_SIZE), jnp.float32)
    s_logp, s_hy, s_rg, s_ig, s_ng = jax.block_until_ready(
        my_decoder_rnn_decode(x_seq, hidden.reshape(1, -1), slab))

    h_ref = hidden.reshape(1, -1)
    for t in range(T):
        rl, rh, rr, ri, rn = _reference_step(x_seq[t:t + 1], h_ref, params)
        assert jnp.allclose(s_logp[t:t + 1], rl, **tol)
        assert jnp.allclose(s_hy[t:t + 1], rh, **tol)
        assert jnp.allclose(s_rg[t:t + 1], rr, **tol)
        assert jnp.allclose(s_ig[t:t + 1], ri, **tol)
        assert jnp.allclose(s_ng[t:t + 1], rn, **tol)
        h_ref = rh

    print("KERNEL_OK")
</pallas_src>

<mosaic_0001>
module attributes {stable_mosaic.version = 11 : i64} {
  func.func @_decoder_kernel(%arg0: memref<1x16xf32, #tpu.memory_space<vmem>>, %arg1: memref<1x16xf32, #tpu.memory_space<vmem>>, %arg2: memref<56x128xf32, #tpu.memory_space<vmem>>, %arg3: memref<1x128xf32, #tpu.memory_space<vmem>>, %arg4: memref<1x128xf32, #tpu.memory_space<vmem>>) attributes {dimension_semantics = [], scalar_prefetch = 0 : i64, scratch_operands = 1 : i64, tpu.core_type = #tpu.core_type<tc>} {
    %c0 = arith.constant 0 : index
    %c0_0 = arith.constant 0 : index
    %0 = vector.load %arg2[%c0, %c0_0] : memref<56x128xf32, #tpu.memory_space<vmem>>, vector<16x128xf32>
    %c16 = arith.constant 16 : index
    %c0_1 = arith.constant 0 : index
    %1 = vector.load %arg2[%c16, %c0_1] : memref<56x128xf32, #tpu.memory_space<vmem>>, vector<16x128xf32>
    %c48 = arith.constant 48 : index
    %c0_2 = arith.constant 0 : index
    %2 = vector.load %arg2[%c48, %c0_2] : memref<56x128xf32, #tpu.memory_space<vmem>>, vector<1x128xf32>
    %c49 = arith.constant 49 : index
    %c0_3 = arith.constant 0 : index
    %3 = vector.load %arg2[%c49, %c0_3] : memref<56x128xf32, #tpu.memory_space<vmem>>, vector<1x128xf32>
    %c0_4 = arith.constant 0 : index
    %c0_5 = arith.constant 0 : index
    %4 = vector.load %arg0[%c0_4, %c0_5] : memref<1x16xf32, #tpu.memory_space<vmem>>, vector<1x16xf32>
    %cst = arith.constant dense<0.000000e+00> : vector<1x128xf32>
    %5 = tpu.matmul %4, %0, %cst {dimension_numbers = #tpu.dot_dimension_numbers<[1], [0], [0], [1], [0, 0, 1, 1], [], []>} : vector<1x16xf32>, vector<16x128xf32>, vector<1x128xf32> -> vector<1x128xf32>
    %6 = arith.addf %5, %2 : vector<1x128xf32>
    %c0_6 = arith.constant 0 : index
    %c0_7 = arith.constant 0 : index
    %7 = vector.load %arg4[%c0_6, %c0_7] : memref<1x128xf32, #tpu.memory_space<vmem>>, vector<1x128xf32>
    tpu.vector_store %arg4[%c0_6, %c0_7], %6 {strides = array<i32>} : memref<1x128xf32, #tpu.memory_space<vmem>>, vector<1x128xf32>,
    %cst_8 = arith.constant 0.000000e+00 : f32
    %8 = vector.broadcast %cst_8 : f32 to vector<1x32xf32>
    %cst_9 = arith.constant 0.000000e+00 : f32
    %9 = vector.broadcast %cst_9 : f32 to vector<1x32xf32>
    %c0_10 = arith.constant 0 : index
    %c0_11 = arith.constant 0 : index
    %10 = vector.load %arg1[%c0_10, %c0_11] : memref<1x16xf32, #tpu.memory_space<vmem>>, vector<1x16xf32>
    %c0_i32 = arith.constant 0 : i32
    %11 = arith.index_cast %c0_i32 : i32 to index
    %c0_12 = arith.constant 0 : index
    %12 = vector.load %arg4[%11, %c0_12] : memref<1x128xf32, #tpu.memory_space<vmem>>, vector<1x128xf32>
    %cst_13 = arith.constant dense<0.000000e+00> : vector<1x128xf32>
    %13 = tpu.matmul %10, %1, %cst_13 {dimension_numbers = #tpu.dot_dimension_numbers<[1], [0], [0], [1], [0, 0, 1, 1], [], []>} : vector<1x16xf32>, vector<16x128xf32>, vector<1x128xf32> -> vector<1x128xf32>
    %14 = arith.addf %13, %3 : vector<1x128xf32>
    %15 = arith.addf %12, %14 : vector<1x128xf32>
    %16 = vector.extract_strided_slice %15 {offsets = [0, 0], sizes = [1, 16], strides = [1, 1]} : vector<1x128xf32> to vector<1x16xf32>
    %17 = arith.negf %16 : vector<1x16xf32>
    %18 = math.exp %17 : vector<1x16xf32>
    %cst_14 = arith.constant 1.000000e+00 : f32
    %19 = vector.broadcast %cst_14 : f32 to vector<1x16xf32>
    %20 = arith.addf %19, %18 : vector<1x16xf32>
    %21 = arith.divf %19, %20 : vector<1x16xf32>
    %22 = vector.extract_strided_slice %15 {offsets = [0, 16], sizes = [1, 16], strides = [1, 1]} : vector<1x128xf32> to vector<1x16xf32>
    %23 = arith.negf %22 : vector<1x16xf32>
    %24 = math.exp %23 : vector<1x16xf32>
    %cst_15 = arith.constant 1.000000e+00 : f32
    %25 = vector.broadcast %cst_15 : f32 to vector<1x16xf32>
    %26 = arith.addf %25, %24 : vector<1x16xf32>
    %27 = arith.divf %25, %26 : vector<1x16xf32>
    %28 = vector.extract_strided_slice %12 {offsets = [0, 32], sizes = [1, 16], strides = [1, 1]} : vector<1x128xf32> to vector<1x16xf32>
    %29 = vector.extract_strided_slice %14 {offsets = [0, 32], sizes = [1, 16], strides = [1, 1]} : vector<1x128xf32> to vector<1x16xf32>
    %30 = arith.mulf %21, %29 : vector<1x16xf32>
    %31 = arith.addf %28, %30 : vector<1x16xf32>
    %32 = math.tanh %31 : vector<1x16xf32>
    %33 = arith.subf %10, %32 : vector<1x16xf32>
    %34 = arith.mulf %27, %33 : vector<1x16xf32>
    %35 = arith.addf %32, %34 : vector<1x16xf32>
    %36 = tpu.concatenate %8, %35, %21, %27, %32, %9 in 1 : vector<1x32xf32>, vector<1x16xf32>, vector<1x16xf32>, vector<1x16xf32>, vector<1x16xf32>, vector<1x32xf32> -> vector<1x128xf32>
    %37 = arith.index_cast %c0_i32 : i32 to index
    %c0_16 = arith.constant 0 : index
    %38 = vector.load %arg3[%37, %c0_16] : memref<1x128xf32, #tpu.memory_space<vmem>>, vector<1x128xf32>
    tpu.vector_store %arg3[%37, %c0_16], %36 {strides = array<i32>} : memref<1x128xf32, #tpu.memory_space<vmem>>, vector<1x128xf32>,
    %c1_i32 = arith.constant 1 : i32
    %c0_17 = arith.constant 0 : index
    %c32 = arith.constant 32 : index
    %39 = vector.load %arg3[%c0_17, %c32] : memref<1x128xf32, #tpu.memory_space<vmem>>, vector<1x16xf32>
    %c32_18 = arith.constant 32 : index
    %c0_19 = arith.constant 0 : index
    %40 = vector.load %arg2[%c32_18, %c0_19] : memref<56x128xf32, #tpu.memory_space<vmem>>, vector<16x128xf32>
    %cst_20 = arith.constant dense<0.000000e+00> : vector<1x128xf32>
    %41 = tpu.matmul %39, %40, %cst_20 {dimension_numbers = #tpu.dot_dimension_numbers<[1], [0], [0], [1], [0, 0, 1, 1], [], []>} : vector<1x16xf32>, vector<16x128xf32>, vector<1x128xf32> -> vector<1x128xf32>
    %42 = vector.extract_strided_slice %41 {offsets = [0, 0], sizes = [1, 32], strides = [1, 1]} : vector<1x128xf32> to vector<1x32xf32>
    %c50 = arith.constant 50 : index
    %c0_21 = arith.constant 0 : index
    %43 = vector.load %arg2[%c50, %c0_21] : memref<56x128xf32, #tpu.memory_space<vmem>>, vector<1x32xf32>
    %44 = arith.addf %42, %43 : vector<1x32xf32>
    %cst_22 = arith.constant dense<0xFF800000> : vector<1xf32>
    %45 = vector.multi_reduction <maximumf>, %44, %cst_22 [1] : vector<1x32xf32> to vector<1xf32>
    %46 = vector.shape_cast %45 : vector<1xf32> to vector<1x1xf32>
    %47 = vector.broadcast %46 : vector<1x1xf32> to vector<1x32xf32>
    %48 = arith.subf %44, %47 : vector<1x32xf32>
    %49 = math.exp %48 : vector<1x32xf32>
    %cst_23 = arith.constant dense<0.000000e+00> : vector<1xf32>
    %50 = vector.multi_reduction <add>, %49, %cst_23 [1] : vector<1x32xf32> to vector<1xf32>
    %51 = vector.shape_cast %50 : vector<1xf32> to vector<1x1xf32>
    %52 = math.log %51 : vector<1x1xf32>
    %53 = arith.addf %52, %46 : vector<1x1xf32>
    %54 = vector.broadcast %53 : vector<1x1xf32> to vector<1x32xf32>
    %55 = arith.subf %44, %54 : vector<1x32xf32>
    %c0_24 = arith.constant 0 : index
    %c0_25 = arith.constant 0 : index
    %56 = vector.load %arg3[%c0_24, %c0_25] : memref<1x128xf32, #tpu.memory_space<vmem>>, vector<1x32xf32>
    tpu.vector_store %arg3[%c0_24, %c0_25], %55 {strides = array<i32>} : memref<1x128xf32, #tpu.memory_space<vmem>>, vector<1x32xf32>,
    return
  }
}

</mosaic_0001>

<bundles_post_ra>
// kernel: my_decoder_rnn_decode.1
= control target key start
LH: loop header
LB: loop body
LE: loop exit
PB: predicated region body
PF: predicated region fallthrough
CT: control target
= control target key end

     0   :  { %8 = vsyncpa [#allocation4], 0  ;;  %s576_s0 = inlined_call_operand.hbm [shape: f32[1,16], index: 0, kind: input, shape index: {}]   ;;  %s577_s1 = inlined_call_operand.vmem [shape: f32[1,16], index: 1, kind: input, shape index: {}]   ;;  %s578_s2 = inlined_call_operand.hbm [shape: f32[56,128], index: 2, kind: input, shape index: {}]   ;;  %s579_s3 = inlined_call_operand.vmem [shape: f32[1,128], index: 3, kind: output, shape index: {}]  }
   0x1   :  { %9 = vsyncpa [#allocation6], 0  ;;  %s489_s12 = smov [#allocation3]   ;;  %s490_s14 = smov [#allocation5]  }
   0x2   :  { %s16_s13 = sshll.u32 %s489_s12, 4  ;;  %s27_s15 = sshll.u32 %s490_s14, 4  ;;  %s17_s13 = int_to_ptr.vmem [resolvable:$true] %s16_s13  ;;  %s521_s15 = int_to_ptr.vmem [resolvable:$true] %s27_s15 }
   0x3   :  { %s441_s18 = scalar_lea.hbm %s576_s0, 16 }
   0x4   :  { %p442_p0 = scmp.ne.s32.totalorder %s576_s0, %s441_s18  ;;  %p445_p1 = scmp.lt.u32.totalorder %s441_s18, %s576_s0 }
   0x6   :  { %p447_p2 = pnand %p445_p1, %p442_p0 }
   0x8   :  { %450 = shalt.err (!%p447_p2)
}
   0x9   :  { %s451_s23 = scalar_lea.vmem %s17_s13, 16  ;;  %s455_s24 = scalar_lea.vmem %s17_s13, 32 }
   0xa   :  { %p452_p3 = scmp.ne.s32.totalorder %s17_s13, %s451_s23  ;;  %p456_p4 = scmp.lt.s32.totalorder %s17_s13, %s17_s13 }
   0xb   :  { %p457_p5 = scmp.lt.s32.totalorder %s455_s24, %s451_s23 }
   0xd   :  { %p458_p6 = por %p457_p5, %p456_p4 }
   0xf   :  { %p459_p7 = pnand %p458_p6, %p452_p3 }
  0x11   :  { %462 = shalt.err (!%p459_p7)
}
  0x12   :  { %19 = dma.hbm_to_vmem [thread:$0]  %s576_s0, 16, %s17_s13, [#allocation4]  }
  0x13   :  { %s463_s29 = scalar_lea.hbm %s578_s2, 896 }
  0x14   :  { %p464_p8 = scmp.ne.s32.totalorder %s578_s2, %s463_s29  ;;  %p467_p9 = scmp.lt.u32.totalorder %s463_s29, %s578_s2 }
  0x16   :  { %p469_p10 = pnand %p467_p9, %p464_p8 }
  0x18   :  { %472 = shalt.err (!%p469_p10)
}
  0x19   :  { %s473_s7 = scalar_lea.vmem %s521_s15, 896  ;;  %p478_p12 = scmp.lt.s32.totalorder %s521_s15, %s521_s15 }
  0x1a   :  { %p474_p11 = scmp.ne.s32.totalorder %s521_s15, %s473_s7  ;;  %p479_p13 = scmp.lt.s32.totalorder %s473_s7, %s473_s7 }
  0x1c   :  { %p480_p0 = por %p479_p13, %p478_p12 }
  0x1e   :  { %p481_p1 = pnand %p480_p0, %p474_p11 }
  0x20   :  { %484 = shalt.err (!%p481_p1)
}
  0x21   :  { %s491_s0 = smov 128   ;;  %s492_s8 = smov 8  }
  0x22   :  { %33 = dma.hbm_to_vmem [thread:$0]  %s578_s2, 896, %s521_s15, [#allocation6], %s491_s0, %s491_s0, %s492_s8  }
  0x23   :  { %485 = dma.done.wait [#allocation4], 16  }
  0x24   :  { %486 = vsyncadd [#allocation4], 4294967280 }
  0x25   :  { %487 = dma.done.wait [#allocation6], 896  }
  0x26   :  { %488 = vsyncadd [#allocation6], 4294966400  ;;  %v493_v0 = vmov 0.0|0.0   ;;  %vm494_vm0 = vmmov 0   ;;  %v495_v1 = vmov 0.0   ;;  %v40_v2 = vld [vmem:[#allocation5] sm:$0xff]  ;;  %v208_v12 = vlaneseq }
  0x27   :  { %410 = vmatprep.subr.bf16.mxu0 %v493_v0  ;;  %413 = vmatprep.subr.bf16.mxu1 %v493_v0  ;;  %v41_v3 = vld [vmem:[#allocation5 + $0x8] sm:$0xff]  ;;  %v42_v4 = vld [vmem:[#allocation5 + $0x10] sm:$0xff]  ;;  %v43_v6 = vld [vmem:[#allocation5 + $0x18] sm:$0xff]  ;;  %vm47_vm1 = vcmask 130048   ;;  %v496_v10 = vmov 1966171168  }
  0x28   :  { %393 = vmatprep.mubr.msk.f32.mxu0 %vm494_vm0, %v495_v1  ;;  %400 = vmatprep.mubr.msk.f32.mxu1 %vm494_vm0, %v495_v1  ;;  %v411_v5 = vpack.c.bf16 %v41_v3, %v40_v2  ;;  %v414_v7 = vpack.c.bf16 %v43_v6, %v42_v4  ;;  %v46_v8 = vld [vmem:[#allocation3] sm:$0x1]  ;;  %v122_v9 = vld [vmem:[%s577_s1] sm:$0x1]  ;;  %v206_v11 = vunpack.c.l.s4 %v496_v10  ;;  %v209_v14 = vshrl.u32 %v208_v12, 7  ;;  %s497_s1 = smov 96  }
  0x29   :  { %v44_v15 = vld [vmem:[#allocation5 + $0x30] sm:$0x1]  ;;  %v45_v16 = vld [vmem:[#allocation5 + $0x31] sm:$0x1]  ;;  %s498_s12 = smov 32   ;;  %s499_s13 = smov 16  }
  0x2a   :  { %412 = vmatpush3.bf16.msra.mxu0 %v411_v5  ;;  %415 = vmatpush3.bf16.msra.mxu1 %v414_v7  ;;  %v207_v13 = vunpack.c.0.s8 %v206_v11  ;;  %v247_v39 = vsub.s32 0, %v209_v14  ;;  %s500_s14 = smov 48   ;;  %v271_v44 = vld [vmem:[#allocation5 + $0x20] sm:$0xff]  ;;  %v272_v45 = vld [vmem:[#allocation5 + $0x28] sm:$0xff]  ;;  %vm259_vm2 = vcmask 261120   ;;  %vm261_vm3 = vcmask 392192  }
  0x2b   :  { %416 = vmatprep.subr.bf16.mxu0 %v493_v0  ;;  %v417_v46 = vpack.c.bf16 %v272_v45, %v271_v44  ;;  %vm263_vm4 = vcmask 523264   ;;  %vm265_vm5 = vcmask 654336   ;;  %vm267_vm6 = vcmask 785408   ;;  %v352_v58 = vld [vmem:[#allocation5 + $0x32] sm:$0x1] }
  0x2c   :  { %v210_v18 = vsub.s32 %v207_v13, %v209_v14  ;;  %vm354_vm7 = vcmask 253952  }
  0x2d   :  { %394 = vmatmul.mubr.msk.f32.vlgmr.msra.gmra.mrb[0].mxu0 %vm47_vm1, %v46_v8  ;;  %401 = vmatmul.mubr.msk.f32.vlgmr.msra.gmra.mrb[0].mxu1 %vm47_vm1, %v122_v9 }
  0x2e   :  { %407 = vmatprep.mubr.msk.f32.mxu0 %vm494_vm0, %v495_v1  ;;  %418 = vmatpush3.bf16.msra.mxu0 %v417_v46 }
 0x100   :  { %v117_v17 = vpop.f32.mrb[0].mxu0  ;;  %v193_v20 = vpop.f32.mrb[0].mxu1 }
 0x101   :  { %v118_v19 = vadd.f32 %v117_v17, %v44_v15  ;;  %v395_v21 = vpop.f32.mrb[1].mxu0  ;;  %v194_v22 = vadd.f32 %v193_v20, %v45_v16  ;;  %v402_v23 = vpop.f32.mrb[1].mxu1 }
 0x103   :  { %121 = vst [vmem:[#allocation2] sm:$0x1] %v118_v19  ;;  %v211_v24 = vrot.slane %v194_v22, %v210_v18 }
 0x105   :  { %v218_v25 = vrot.slane %v211_v24, %v210_v18 }
 0x107   :  { %219 = vrot.lane.b32.xlu0 %v218_v25, %s497_s1 }
 0x10a   :  { %v123_v26 = vld [vmem:[#allocation2] sm:$0x1] }
 0x10b   :  { %v197_v27 = vadd.f32 %v194_v22, %v123_v26 }
 0x10d   :  { %v377_v28 = vmul.f32 -1.442695, %v197_v27 }
 0x10f   :  { %431 = vpow2.f32 %v377_v28 }
 0x119   :  { %v432_v29 = vpop.eup %431 }
 0x11a   :  { %v201_v30 = vadd.f32 1.0, %v432_v29 }
 0x11c   :  { %433 = vrcp.f32 %v201_v30 }
 0x126   :  { %v434_v31 = vpop.eup %433 }
 0x127   :  { %v248_v40 = vrot.slane %v434_v31, %v247_v39 }
 0x179   :  { %v220_v32 = vpop.permute.xlu0 %219 }
 0x17a   :  { %v222_v33 = vmul.f32 %v434_v31, %v220_v32 }
 0x17c   :  { %224 = vrot.lane.b32.xlu0 %v222_v33, %s498_s12 }
 0x1ee   :  { %v225_v34 = vpop.permute.xlu0 %224 }
 0x1ef   :  { %v227_v35 = vadd.f32 %v225_v34, %v123_v26 }
 0x1f1   :  { %435 = vtanh.f32 %v227_v35 }
 0x1fb   :  { %v436_v36 = vpop.eup %435 }
 0x1fc   :  { %230 = vrot.lane.b32.xlu1 %v436_v36, %s497_s1  ;;  %v255_v43 = vrot.slane %v436_v36, %v247_v39 }
 0x26e   :  { %v231_v37 = vpop.permute.xlu1 %230 }
 0x26f   :  { %v233_v38 = vsub.f32 %v122_v9, %v231_v37 }
 0x271   :  { %235 = vrot.lane.b32.xlu1 %v233_v38, %s499_s13 }
 0x275   :  { %249 = vrot.lane.b32.xlu1 %v248_v40, %s500_s14 }
 0x2e3   :  { %v236_v41 = vpop.permute.xlu1 %235 }
 0x2e4   :  { %v238_v42 = vmul.f32 %v434_v31, %v236_v41 }
 0x2e6   :  { %240 = vrot.lane.b32.xlu0 %v238_v42, %s499_s13 }
 0x2e7   :  { %v250_v49 = vpop.permute.xlu1 %249 }
 0x2ea   :  { %256 = vrot.lane.b32.xlu0 %v255_v43, %s500_s14 }
 0x358   :  { %v241_v47 = vpop.permute.xlu0 %240 }
 0x359   :  { %v243_v48 = vadd.f32 %v436_v36, %v241_v47 }
 0x35b   :  { %v260_v50 = vsel %vm259_vm2, 0.0, %v243_v48 }
 0x35c   :  { %v262_v51 = vsel %vm261_vm3, %v260_v50, %v250_v49  ;;  %v257_v52 = vpop.permute.xlu0 %256 }
 0x35d   :  { %v264_v53 = vsel %vm263_vm4, %v262_v51, %v250_v49 }
 0x35e   :  { %v266_v54 = vsel %vm265_vm5, %v264_v53, %v257_v52 }
 0x35f   :  { %v268_v55 = vsel %vm267_vm6, %v266_v54, 0.0 }
 0x360   :  { %269 = vst [vmem:[%s579_s3] sm:$0x1] %v268_v55 }
 0x367   :  { %v378_v56 = vld [vmem:[%s579_s3] ss:$0 sm:$0xff] }
 0x368   :  { %278 = vrot.lane.b32.xlu1 %v378_v56, %s497_s1 }
 0x3da   :  { %v279_v57 = vpop.permute.xlu1 %278 }
 0x3db   :  { %408 = vmatmul.mubr.msk.f32.vlgmr.msra.gmra.mrb[2].mxu0 %vm47_vm1, %v279_v57 }
 0x4ae   :  { %v348_v59 = vpop.f32.mrb[2].mxu0 }
 0x4af   :  { %v353_v60 = vadd.f32 %v352_v58, %v348_v59  ;;  %v409_v61 = vpop.f32.mrb[3].mxu0 }
 0x4b1   :  { %v355_v62 = vsel %vm354_vm7, %v353_v60, -inf }
 0x4b2   :  { %356 = vmax.xlane.f32.xlu0 %v355_v62 }
 0x53f   :  { %v357_v63 = vpop.xlane.xlu0 %356 }
 0x540   :  { %v358_v0 = vsub.f32 %v353_v60, %v357_v63 }
 0x542   :  { %v359_v1 = vmul.f32 1.442695, %v358_v0 }
 0x544   :  { %437 = vpow2.f32 %v359_v1 }
 0x54e   :  { %v438_v2 = vpop.eup %437 }
 0x54f   :  { %v361_v3 = vsel %vm354_vm7, %v438_v2, 0.0 }
 0x550   :  { %362 = vadd.xlane.f32.xlu1 %v361_v3 }
 0x5dd   :  { %v363_v4 = vpop.xlane.xlu1 %362 }
 0x5de   :  { %439 = vlog2.f32 %v363_v4 }
 0x5e8   :  { %v440_v5 = vpop.eup %439 }
 0x5e9   :  { %v365_v6 = vmul.f32 0.6931472, %v440_v5 }
 0x5eb   :  { %v366_v7 = vadd.f32 %v365_v6, %v357_v63 }
 0x5ed   :  { %v367_v8 = vsub.f32 %v353_v60, %v366_v7 }
 0x5ef   :  { %368 = vst.msk [vmem:[%s579_s3] sm:$0x1] %vm354_vm7, %v367_v8 }
 0x5f0   :  { %373 = vsyncpa [#allocation4], 1 }
 0x5f1   :  { %374 = vsyncpa [#allocation6], 1 }

</bundles_post_ra>
